<compile_context>
chip_gen: v6e
topology: v6e:2x2x1
jax: 0.10.0
libtpu: 0.0.40
codegen_flags: <defaults>
</compile_context>

<pallas_src>
import functools

import jax
import jax.numpy as jnp
from jax import lax
from jax.experimental import pallas as pl
from jax.experimental.pallas import tpu as pltpu


def _round_up(x, m):
    return (x + m - 1) // m * m


# ----------------------------- Pallas kernel ------------------------------ #
def _fused_concat_conv_bn_relu_kernel(
    x_ref,     # (Cin, Tb)        bf16 : flattened padded pixels, rows [i*th, i*th+th)
    h_ref,     # (Cin, 4*S)       bf16 : 4 halo rows starting at padded row (i+1)*th
    w_ref,     # (9, Cout, Cin)   bf16 : conv weights per tap (BN scale folded in)
    b_ref,     # (Cout, 1)        f32  : folded BatchNorm bias
    out_ref,   # (Cout, Tb)       f32  : channel-major output tile (lane-dense)
    *,
    row_stride,    # S (flat stride of one padded image row, multiple of 32)
    tile_pixels,   # Tb = tile_rows * S (multiple of 128)
):
    s = row_stride
    tb = tile_pixels

    # (th + 4)-row window for this tile: main rows + 4 halo rows (only a tiny copy,
    # ~(th+4)/th of one input tile, instead of the previous 2x-tile concat).
    x2 = jnp.concatenate([x_ref[...], h_ref[...]], axis=1)          # (Cin, Tb + 4*S)

    # 3x3 conv = 9 chained MXU dots over static lane-shifted slabs; f32 accumulation.
    # No (9*Cin, Tb) im2col workspace, no sublane concat.
    acc = None
    for t in range(9):
        dy, dx = t // 3, t % 3
        slab = x2[:, dy * s + dx: dy * s + dx + tb]                  # (Cin, Tb)
        part = jnp.dot(w_ref[t], slab, preferred_element_type=jnp.float32)
        acc = part if acc is None else acc + part

    # Folded-BN bias + ReLU epilogue (f32), lane-dense store.
    out_ref[...] = jnp.maximum(acc + b_ref[...], 0.0).astype(out_ref.dtype)


# ------------------------------ Wrapper ------------------------------------ #
def _concat_conv_bn_relu(img_nchw, lidar_nchw, params, *, tile_rows=None):
    """concat(img, lidar, dim=C) -> Conv2d3x3(pad=1) -> BN(eval) -> ReLU via Pallas."""
    assert img_nchw.shape[0] == 1 and lidar_nchw.shape[0] == 1, "batch must be 1"
    _, c1, h, w = img_nchw.shape
    _, c2, _, _ = lidar_nchw.shape
    cout = params["w"].shape[0]
    cin = c1 + c2

    cin_p = _round_up(cin, 16)          # bf16 sublane packing / MXU-friendly K
    cout_p = _round_up(cout, 8)
    s = _round_up(w + 2, 32)            # padded row stride; 32-aligned => 4 rows = 128 lanes

    # ---- generation-aware VMEM budget & tile sizing ----
    try:
        vmem_cap = pltpu.get_tpu_info().vmem_capacity_bytes
    except Exception:
        vmem_cap = 64 * 1024 * 1024     # conservative (v7x per-TC) fallback
    budget = min(int(vmem_cap * 0.45), 36 * 1024 * 1024)
    per_px = 10 * cin_p + 12 * cout_p   # ~VMEM bytes per flattened pixel (bufs + workspace)

    if tile_rows is None:
        th = (budget // per_px) // s                     # rows that fit the budget
        th = max(4, min(th, _round_up(h, 4)))
        if h >= 8:                                       # >= 2 row tiles -> both v7x TCs busy
            th = min(th, _round_up(pl.cdiv(h, 2), 4))
        th = max(4, (th // 4) * 4)
        # Prefer an exact (multiple-of-4) divisor of H close to th: no junk tail rows.
        for cand in range(th, max(3, th // 2), -4):
            if h % cand == 0:
                th = cand
                break
    else:
        th = max(4, _round_up(min(tile_rows, max(h, 1)), 4))

    n = pl.cdiv(h, th)                  # number of row tiles (grid size)
    tb = th * s                         # flattened pixels per tile (multiple of 128)
    rows_total = n * th + 4             # top pad + data + bottom pad + halo slack rows

    # Channel concat (== torch.cat([img, lidar], dim=1)); cast to bf16 BEFORE padding so
    # the pad/reshape pass moves half the bytes. One zero-pad pass, then a free reshape
    # to the flattened row-major layout (no transposes).
    x = jnp.concatenate([img_nchw[0].astype(jnp.bfloat16),
                         lidar_nchw[0].astype(jnp.bfloat16)], axis=0)     # (Cin, H, W)
    xp = jnp.pad(x, ((0, cin_p - cin), (1, rows_total - h - 1), (1, s - w - 1)))
    xflat = xp.reshape(cin_p, rows_total * s)                             # (Cin_p, rows*S)

    # Fold BatchNorm (eval) scale into the conv weights; keep bias as the epilogue.
    eps = 1e-5
    scale = params["gamma"] / jnp.sqrt(params["running_var"] + eps)       # (Cout,)
    bias = (params["beta"] - params["running_mean"] * scale).astype(jnp.float32)
    wf = params["w"] * scale[:, None, None, None]                         # (Cout,Cin,3,3)
    wf = jnp.pad(wf, ((0, cout_p - cout), (0, cin_p - cin), (0, 0), (0, 0)))
    w_taps = jnp.transpose(wf, (2, 3, 0, 1)).reshape(9, cout_p, cin_p)    # [t, co, ci]
    w_taps = w_taps.astype(jnp.bfloat16)
    bias_p = jnp.pad(bias, (0, cout_p - cout)).reshape(cout_p, 1)

    # VMEM accounting (double-buffered blocks + in-kernel window/accumulator).
    vmem_need = (2 * cin_p * tb * 2            # main input block x 2 buffers, bf16
                 + 2 * cin_p * 4 * s * 2       # halo block x 2 buffers, bf16
                 + 2 * cout_p * tb * 4         # output block x 2 buffers, f32
                 + cin_p * (tb + 4 * s) * 2    # assembled window x2
                 + 2 * cin_p * tb * 2          # transient tap slabs
                 + cout_p * tb * 4             # f32 accumulator
                 + 2 * 9 * cout_p * cin_p * 2  # resident weights (double-buffered)
                 + 2 * cout_p * 128 * 4)       # bias (lane-padded)
    vmem_limit = int(min(max(vmem_cap - 8 * 2**20, 16 * 2**20),
                         max(32 * 2**20, vmem_need + vmem_need // 2)))

    kernel = functools.partial(_fused_concat_conv_bn_relu_kernel,
                               row_stride=s, tile_pixels=tb)

    out = pl.pallas_call(
        kernel,
        out_shape=jax.ShapeDtypeStruct((cout_p, n * tb), jnp.float32),
        grid=(n,),
        in_specs=[
            # main tile: flattened padded rows [i*th, i*th + th)
            pl.BlockSpec((cin_p, tb), lambda i: (0, i)),
            # 4-row halo starting at padded row (i+1)*th, taken straight from the same
            # HBM array (4*S is a multiple of 128, th a multiple of 4 => integer block idx)
            pl.BlockSpec((cin_p, 4 * s), lambda i: (0, (i + 1) * (th // 4))),
            pl.BlockSpec((9, cout_p, cin_p), lambda i: (0, 0, 0)),   # resident weights
            pl.BlockSpec((cout_p, 1), lambda i: (0, 0)),             # resident bias
        ],
        out_specs=pl.BlockSpec((cout_p, tb), lambda i: (0, i)),
        compiler_params=pltpu.CompilerParams(
            dimension_semantics=("parallel",),
            vmem_limit_bytes=vmem_limit),
    )(xflat, xflat, w_taps, bias_p)

    # (Cout_p, n*Tb) -> (Cout_p, n*th, S) (free reshape) -> crop channel/row/col padding.
    y = out.reshape(cout_p, n * th, s)[:cout, :h, :w]
    return y[None]                                                   # (1, Cout, H, W)


# --------------------------- ConcatBEV.forward ----------------------------- #
def concat_bev_forward(inputs, params, *, tile_rows=None):
    img_bev_feat = inputs["img_enc_features"][-1]             # (1, C1, H, W)
    lidar_enc_feat = inputs["lidar_enc_features"][-1][None]   # unsqueeze(0): (1, C2, H, W)
    bev = _concat_conv_bn_relu(img_bev_feat, lidar_enc_feat, params,
                               tile_rows=tile_rows)           # (1, Cout, H, W)
    return {"bev_enc_features": list(bev[None])}              # list of (1, Cout, H, W)


# ------------------------------ Reference ---------------------------------- #
def _reference(img, lidar, params):
    # Mirrors the kernel's bf16 quantisation of activations / folded weights so the
    # comparison isolates kernel correctness (accumulation stays f32 in both).
    eps = 1e-5
    scale = params["gamma"] / jnp.sqrt(params["running_var"] + eps)
    bias = params["beta"] - params["running_mean"] * scale
    wq = (params["w"] * scale[:, None, None, None]
          ).astype(jnp.bfloat16).astype(jnp.float32)
    xq = jnp.concatenate([img, lidar], axis=1).astype(jnp.bfloat16).astype(jnp.float32)
    y = lax.conv_general_dilated(
        xq, wq, window_strides=(1, 1), padding=((1, 1), (1, 1)),
        dimension_numbers=("NCHW", "OIHW", "NCHW"),
        precision=lax.Precision.HIGHEST)
    y = y + bias[None, :, None, None]
    return jnp.maximum(y, 0.0)


# --------------------------------- Main ------------------------------------ #
if __name__ == "__main__":
    B, C1, C2, COUT, H, W = 1, 8, 8, 32, 16, 16
    CIN = C1 + C2

    key = jax.random.PRNGKey(0)
    k_img, k_lid, k_w, k_g, k_b, k_m, k_v = jax.random.split(key, 7)

    img_feat = jax.random.normal(k_img, (B, C1, H, W), jnp.float32)
    lidar_feat = jax.random.normal(k_lid, (C2, H, W), jnp.float32)   # no batch dim

    params = {
        "w": jax.random.normal(k_w, (COUT, CIN, 3, 3), jnp.float32) * 0.1,
        "gamma": jax.random.normal(k_g, (COUT,), jnp.float32) * 0.1 + 1.0,
        "beta": jax.random.normal(k_b, (COUT,), jnp.float32) * 0.1,
        "running_mean": jax.random.normal(k_m, (COUT,), jnp.float32) * 0.1,
        "running_var": jnp.abs(jax.random.normal(k_v, (COUT,), jnp.float32)) * 0.1 + 1.0,
    }

    inputs = {
        "img_enc_features": [img_feat],       # forward takes [-1]
        "lidar_enc_features": [lidar_feat],   # forward takes [-1] then unsqueeze(0)
    }

    out = concat_bev_forward(inputs, params)                # auto tile sizing (n >= 2 tiles)
    bev_list = out["bev_enc_features"]
    result = jax.block_until_ready(bev_list[0])             # (1, COUT, H, W)

    ref = _reference(img_feat, lidar_feat[None], params)
    assert result.shape == (B, COUT, H, W), result.shape
    max_err = float(jnp.max(jnp.abs(result - ref)))
    assert jnp.allclose(result, ref, rtol=1e-2, atol=1e-2), max_err

    print("KERNEL_OK")
</pallas_src>

<mosaic_0001>
module attributes {stable_mosaic.version = 11 : i64} {
  func.func @_fused_concat_conv_bn_relu_kernel(%arg0: i32, %arg1: memref<16x256xbf16, #tpu.memory_space<vmem>>, %arg2: memref<16x128xbf16, #tpu.memory_space<vmem>>, %arg3: memref<9x32x16xbf16, #tpu.memory_space<vmem>>, %arg4: memref<32x1xf32, #tpu.memory_space<vmem>>, %arg5: memref<32x256xf32, #tpu.memory_space<vmem>>) attributes {dimension_semantics = [#tpu.dimension_semantics<parallel>], iteration_bounds = array<i64: 2>, scalar_prefetch = 0 : i64, scratch_operands = 0 : i64, tpu.core_type = #tpu.core_type<tc>, window_params = [{transform_indices = @transform_0, window_bounds = array<i64: 16, 256>}, {transform_indices = @transform_1, window_bounds = array<i64: 16, 128>}, {pipeline_mode = #tpu.pipeline_mode<synchronous>, transform_indices = @transform_2, window_bounds = array<i64: 9, 32, 16>}, {pipeline_mode = #tpu.pipeline_mode<synchronous>, transform_indices = @transform_3, window_bounds = array<i64: 32, 1>}, {transform_indices = @transform_4, window_bounds = array<i64: 32, 256>}]} {
    %c0 = arith.constant 0 : index
    %c0_0 = arith.constant 0 : index
    %0 = vector.load %arg1[%c0, %c0_0] : memref<16x256xbf16, #tpu.memory_space<vmem>>, vector<16x256xbf16>
    %c0_1 = arith.constant 0 : index
    %c0_2 = arith.constant 0 : index
    %1 = vector.load %arg2[%c0_1, %c0_2] : memref<16x128xbf16, #tpu.memory_space<vmem>>, vector<16x128xbf16>
    %2 = tpu.concatenate %0, %1 in 1 : vector<16x256xbf16>, vector<16x128xbf16> -> vector<16x384xbf16>
    %3 = vector.extract_strided_slice %2 {offsets = [0, 0], sizes = [16, 256], strides = [1, 1]} : vector<16x384xbf16> to vector<16x256xbf16>
    %c0_3 = arith.constant 0 : index
    %c0_4 = arith.constant 0 : index
    %c0_5 = arith.constant 0 : index
    %4 = vector.load %arg3[%c0_3, %c0_4, %c0_5] : memref<9x32x16xbf16, #tpu.memory_space<vmem>>, vector<1x32x16xbf16>
    %5 = vector.shape_cast %4 : vector<1x32x16xbf16> to vector<32x16xbf16>
    %cst = arith.constant dense<0.000000e+00> : vector<32x256xf32>
    %6 = tpu.matmul %5, %3, %cst {dimension_numbers = #tpu.dot_dimension_numbers<[1], [0], [0], [1], [0, 0, 1, 1], [], []>} : vector<32x16xbf16>, vector<16x256xbf16>, vector<32x256xf32> -> vector<32x256xf32>
    %7 = vector.extract_strided_slice %2 {offsets = [0, 1], sizes = [16, 256], strides = [1, 1]} : vector<16x384xbf16> to vector<16x256xbf16>
    %c1 = arith.constant 1 : index
    %c0_6 = arith.constant 0 : index
    %c0_7 = arith.constant 0 : index
    %8 = vector.load %arg3[%c1, %c0_6, %c0_7] : memref<9x32x16xbf16, #tpu.memory_space<vmem>>, vector<1x32x16xbf16>
    %9 = vector.shape_cast %8 : vector<1x32x16xbf16> to vector<32x16xbf16>
    %cst_8 = arith.constant dense<0.000000e+00> : vector<32x256xf32>
    %10 = tpu.matmul %9, %7, %cst_8 {dimension_numbers = #tpu.dot_dimension_numbers<[1], [0], [0], [1], [0, 0, 1, 1], [], []>} : vector<32x16xbf16>, vector<16x256xbf16>, vector<32x256xf32> -> vector<32x256xf32>
    %11 = arith.addf %6, %10 : vector<32x256xf32>
    %12 = vector.extract_strided_slice %2 {offsets = [0, 2], sizes = [16, 256], strides = [1, 1]} : vector<16x384xbf16> to vector<16x256xbf16>
    %c2 = arith.constant 2 : index
    %c0_9 = arith.constant 0 : index
    %c0_10 = arith.constant 0 : index
    %13 = vector.load %arg3[%c2, %c0_9, %c0_10] : memref<9x32x16xbf16, #tpu.memory_space<vmem>>, vector<1x32x16xbf16>
    %14 = vector.shape_cast %13 : vector<1x32x16xbf16> to vector<32x16xbf16>
    %cst_11 = arith.constant dense<0.000000e+00> : vector<32x256xf32>
    %15 = tpu.matmul %14, %12, %cst_11 {dimension_numbers = #tpu.dot_dimension_numbers<[1], [0], [0], [1], [0, 0, 1, 1], [], []>} : vector<32x16xbf16>, vector<16x256xbf16>, vector<32x256xf32> -> vector<32x256xf32>
    %16 = arith.addf %11, %15 : vector<32x256xf32>
    %17 = vector.extract_strided_slice %2 {offsets = [0, 32], sizes = [16, 256], strides = [1, 1]} : vector<16x384xbf16> to vector<16x256xbf16>
    %c3 = arith.constant 3 : index
    %c0_12 = arith.constant 0 : index
    %c0_13 = arith.constant 0 : index
    %18 = vector.load %arg3[%c3, %c0_12, %c0_13] : memref<9x32x16xbf16, #tpu.memory_space<vmem>>, vector<1x32x16xbf16>
    %19 = vector.shape_cast %18 : vector<1x32x16xbf16> to vector<32x16xbf16>
    %cst_14 = arith.constant dense<0.000000e+00> : vector<32x256xf32>
    %20 = tpu.matmul %19, %17, %cst_14 {dimension_numbers = #tpu.dot_dimension_numbers<[1], [0], [0], [1], [0, 0, 1, 1], [], []>} : vector<32x16xbf16>, vector<16x256xbf16>, vector<32x256xf32> -> vector<32x256xf32>
    %21 = arith.addf %16, %20 : vector<32x256xf32>
    %22 = vector.extract_strided_slice %2 {offsets = [0, 33], sizes = [16, 256], strides = [1, 1]} : vector<16x384xbf16> to vector<16x256xbf16>
    %c4 = arith.constant 4 : index
    %c0_15 = arith.constant 0 : index
    %c0_16 = arith.constant 0 : index
    %23 = vector.load %arg3[%c4, %c0_15, %c0_16] : memref<9x32x16xbf16, #tpu.memory_space<vmem>>, vector<1x32x16xbf16>
    %24 = vector.shape_cast %23 : vector<1x32x16xbf16> to vector<32x16xbf16>
    %cst_17 = arith.constant dense<0.000000e+00> : vector<32x256xf32>
    %25 = tpu.matmul %24, %22, %cst_17 {dimension_numbers = #tpu.dot_dimension_numbers<[1], [0], [0], [1], [0, 0, 1, 1], [], []>} : vector<32x16xbf16>, vector<16x256xbf16>, vector<32x256xf32> -> vector<32x256xf32>
    %26 = arith.addf %21, %25 : vector<32x256xf32>
    %27 = vector.extract_strided_slice %2 {offsets = [0, 34], sizes = [16, 256], strides = [1, 1]} : vector<16x384xbf16> to vector<16x256xbf16>
    %c5 = arith.constant 5 : index
    %c0_18 = arith.constant 0 : index
    %c0_19 = arith.constant 0 : index
    %28 = vector.load %arg3[%c5, %c0_18, %c0_19] : memref<9x32x16xbf16, #tpu.memory_space<vmem>>, vector<1x32x16xbf16>
    %29 = vector.shape_cast %28 : vector<1x32x16xbf16> to vector<32x16xbf16>
    %cst_20 = arith.constant dense<0.000000e+00> : vector<32x256xf32>
    %30 = tpu.matmul %29, %27, %cst_20 {dimension_numbers = #tpu.dot_dimension_numbers<[1], [0], [0], [1], [0, 0, 1, 1], [], []>} : vector<32x16xbf16>, vector<16x256xbf16>, vector<32x256xf32> -> vector<32x256xf32>
    %31 = arith.addf %26, %30 : vector<32x256xf32>
    %32 = vector.extract_strided_slice %2 {offsets = [0, 64], sizes = [16, 256], strides = [1, 1]} : vector<16x384xbf16> to vector<16x256xbf16>
    %c6 = arith.constant 6 : index
    %c0_21 = arith.constant 0 : index
    %c0_22 = arith.constant 0 : index
    %33 = vector.load %arg3[%c6, %c0_21, %c0_22] : memref<9x32x16xbf16, #tpu.memory_space<vmem>>, vector<1x32x16xbf16>
    %34 = vector.shape_cast %33 : vector<1x32x16xbf16> to vector<32x16xbf16>
    %cst_23 = arith.constant dense<0.000000e+00> : vector<32x256xf32>
    %35 = tpu.matmul %34, %32, %cst_23 {dimension_numbers = #tpu.dot_dimension_numbers<[1], [0], [0], [1], [0, 0, 1, 1], [], []>} : vector<32x16xbf16>, vector<16x256xbf16>, vector<32x256xf32> -> vector<32x256xf32>
    %36 = arith.addf %31, %35 : vector<32x256xf32>
    %37 = vector.extract_strided_slice %2 {offsets = [0, 65], sizes = [16, 256], strides = [1, 1]} : vector<16x384xbf16> to vector<16x256xbf16>
    %c7 = arith.constant 7 : index
    %c0_24 = arith.constant 0 : index
    %c0_25 = arith.constant 0 : index
    %38 = vector.load %arg3[%c7, %c0_24, %c0_25] : memref<9x32x16xbf16, #tpu.memory_space<vmem>>, vector<1x32x16xbf16>
    %39 = vector.shape_cast %38 : vector<1x32x16xbf16> to vector<32x16xbf16>
    %cst_26 = arith.constant dense<0.000000e+00> : vector<32x256xf32>
    %40 = tpu.matmul %39, %37, %cst_26 {dimension_numbers = #tpu.dot_dimension_numbers<[1], [0], [0], [1], [0, 0, 1, 1], [], []>} : vector<32x16xbf16>, vector<16x256xbf16>, vector<32x256xf32> -> vector<32x256xf32>
    %41 = arith.addf %36, %40 : vector<32x256xf32>
    %42 = vector.extract_strided_slice %2 {offsets = [0, 66], sizes = [16, 256], strides = [1, 1]} : vector<16x384xbf16> to vector<16x256xbf16>
    %c8 = arith.constant 8 : index
    %c0_27 = arith.constant 0 : index
    %c0_28 = arith.constant 0 : index
    %43 = vector.load %arg3[%c8, %c0_27, %c0_28] : memref<9x32x16xbf16, #tpu.memory_space<vmem>>, vector<1x32x16xbf16>
    %44 = vector.shape_cast %43 : vector<1x32x16xbf16> to vector<32x16xbf16>
    %cst_29 = arith.constant dense<0.000000e+00> : vector<32x256xf32>
    %45 = tpu.matmul %44, %42, %cst_29 {dimension_numbers = #tpu.dot_dimension_numbers<[1], [0], [0], [1], [0, 0, 1, 1], [], []>} : vector<32x16xbf16>, vector<16x256xbf16>, vector<32x256xf32> -> vector<32x256xf32>
    %46 = arith.addf %41, %45 : vector<32x256xf32>
    %c0_30 = arith.constant 0 : index
    %c0_31 = arith.constant 0 : index
    %47 = vector.load %arg4[%c0_30, %c0_31] : memref<32x1xf32, #tpu.memory_space<vmem>>, vector<32x1xf32>
    %48 = vector.broadcast %47 : vector<32x1xf32> to vector<32x256xf32>
    %49 = arith.addf %46, %48 : vector<32x256xf32>
    %cst_32 = arith.constant 0.000000e+00 : f32
    %50 = vector.broadcast %cst_32 : f32 to vector<32x256xf32>
    %51 = arith.maximumf %49, %50 : vector<32x256xf32>
    %c0_33 = arith.constant 0 : index
    %c0_34 = arith.constant 0 : index
    %52 = vector.load %arg5[%c0_33, %c0_34] : memref<32x256xf32, #tpu.memory_space<vmem>>, vector<32x256xf32>
    tpu.vector_store %arg5[%c0_33, %c0_34], %51 {strides = array<i32>} : memref<32x256xf32, #tpu.memory_space<vmem>>, vector<32x256xf32>,
    return
  }
  func.func @transform_0(%arg0: i32) -> (i32, i32) {
    %c0_i32 = arith.constant 0 : i32
    %c0_i32_0 = arith.constant 0 : i32
    return %c0_i32, %arg0 : i32, i32
  }
  func.func @transform_1(%arg0: i32) -> (i32, i32) {
    %c1_i32 = arith.constant 1 : i32
    %0 = arith.addi %arg0, %c1_i32 : i32
    %c2_i32 = arith.constant 2 : i32
    %1 = arith.muli %0, %c2_i32 : i32
    %c0_i32 = arith.constant 0 : i32
    %c0_i32_0 = arith.constant 0 : i32
    return %c0_i32, %1 : i32, i32
  }
  func.func @transform_2(%arg0: i32) -> (i32, i32, i32) {
    %c0_i32 = arith.constant 0 : i32
    %c0_i32_0 = arith.constant 0 : i32
    %c0_i32_1 = arith.constant 0 : i32
    %c0_i32_2 = arith.constant 0 : i32
    return %c0_i32, %c0_i32_0, %c0_i32_1 : i32, i32, i32
  }
  func.func @transform_3(%arg0: i32) -> (i32, i32) {
    %c0_i32 = arith.constant 0 : i32
    %c0_i32_0 = arith.constant 0 : i32
    %c0_i32_1 = arith.constant 0 : i32
    return %c0_i32, %c0_i32_0 : i32, i32
  }
  func.func @transform_4(%arg0: i32) -> (i32, i32) {
    %c0_i32 = arith.constant 0 : i32
    %c0_i32_0 = arith.constant 0 : i32
    return %c0_i32, %arg0 : i32, i32
  }
}

</mosaic_0001>

<bundles_post_ra>
// kernel: tpu_custom_call.1
= control target key start
LH: loop header
LB: loop body
LE: loop exit
PB: predicated region body
PF: predicated region fallthrough
CT: control target
= control target key end

     0   :  { %s2936_s0 = inlined_call_operand.vmem [shape: bf16[16,640], index: 0, kind: input, shape index: {}]   ;;  %s2937_s1 = inlined_call_operand.vmem [shape: bf16[16,640], index: 1, kind: input, shape index: {}]   ;;  %s2938_s2 = inlined_call_operand.vmem [shape: bf16[9,32,16], index: 2, kind: input, shape index: {}]   ;;  %s2939_s3 = inlined_call_operand.vmem [shape: f32[32,1], index: 3, kind: input, shape index: {}]   ;;  %s2940_s4 = inlined_call_operand.hbm [shape: f32[32,512], index: 4, kind: output, shape index: {}]  }
   0x1   :  { %2945 = sst [smem:[#allocation11_spill]] %s2936_s0 }
   0x2   :  { %9 = vsyncpa [#allocation5], 0 }
   0x3   :  { %11 = vsyncpa [#allocation5 + $0x1], 0  ;;  %s2356_s15 = smov 0   ;;  %s2358_s16 = smov 0  }
   0x4   :  { %s2360_s17 = smov 0   ;;  %s2362_s18 = smov 0  }
   0x5   :  { %s2364_s19 = smov 0   ;;  %s2366_s20 = smov 0  }
   0x6 LB: > { %2946 = sst [smem:[#allocation7_spill]] %s2246_s19  ;;  %s2941_s21 = sadd.s32 4294967295, %s2250_s20   ;;  %s2250_s20 = sphi %s2366_s20, %s2966_s20   ;;  %s2246_s19 = sphi %s2364_s19, %s2974_s19   ;;  %s2242_s18 = sphi %s2362_s18, %s2973_s18   ;;  %s2238_s17 = sphi %s2360_s17, %s2972_s17   ;;  %s2234_s16 = sphi %s2358_s16, %s2971_s16   ;;  %s2230_s15 = sphi %s2356_s15, %s2970_s15  }
   0x7   : > { %s1757_s22 = sadd.s32 4294967294, %s2250_s20   ;;  %s2389_s23 = sadd.s32 1, %s2250_s20  }
   0x8   : > { %2947 = sst [smem:[#allocation8_spill]] %s2389_s23  ;;  %s24_s24 = sadd.s32 1, %s2246_s19 }
   0x9   : > { %s21_s25 = ssub.s32 %s2250_s20, %s2389_s23  ;;  %p31_p0 = scmp.ne.s32.totalorder %s2246_s19, %s2242_s18 }
   0xa   : > { %p22_p1 = scmp.eq.s32.totalorder %s21_s25, 0  ;;  %p32_p2 = scmp.eq.s32.totalorder %s2250_s20, 0 }
   0xb   : > { %s1875_s26 = sshll.u32 %s2250_s20, 1  ;;  %s54_s27 = sadd.s32 1, %s2238_s17 }
   0xc   : > { %s2400_s28 = scalar_select %p22_p1, %s2246_s19, %s24_s24  }
   0xd   : > { %p2405_p3 = por %p32_p2, %p31_p0  ;;  %s1876_s30 = sadd.s32 2, %s1875_s26 }
   0xe   : > { %2948 = sst [smem:[#allocation9_spill]] %s2400_s28  ;;  %s1878_s5 = sadd.s32 2, %s1876_s30 }
   0xf   : > { %p61_p4 = scmp.ne.s32.totalorder %s2238_s17, %s2234_s16  ;;  %s51_s6 = ssub.s32 %s1876_s30, %s1878_s5 }
  0x10   : > { %p133_p5 = scmp.eq.s32.totalorder %s2941_s21, 1  ;;  %p52_p6 = scmp.eq.s32.totalorder %s51_s6, 0 }
  0x11   : > { %p2413_p7 = por %p61_p4, %p32_p2  ;;  %p138_p9 = scmp.ne.s32.totalorder %s2242_s18, %s2230_s15 }
  0x12   : > { %p2420_p8 = por %p133_p5, %p31_p0  ;;  %p139_p10 = scmp.eq.s32.totalorder %s1757_s22, 1 }
  0x13   : > { %s2427_s9 = scalar_select %p52_p6, %s2238_s17, %s54_s27  }
  0x14   : > { %p2429_p11 = por %p139_p10, %p138_p9  ;;  %p1761_p12 = scmp.ge.s32.totalorder %s2250_s20, 2 }
  0x15   : > { %2952 = sst [smem:[#allocation10_spill]] %s2427_s9 }
  0x16   : > { %161 = sbr.rel (%p1761_p12) target bundleno = 153 (0x99), region = 24 }
  0x1b   : > { %164 = sbr.rel (!%p2405_p3) target bundleno = 148 (0x94), region = 28  ;;  %s166_s11 = sand.u32 (%p2405_p3), 1, %s2246_s19  }
  0x1c   : > { %s170_s12 = ssub.s32 (%p2405_p3), 5, %s1875_s26  ;;  %s1762_s13 = sshll.u32 (%p2405_p3), %s166_s11, 4 }
  0x1d   : > { %p171_p13 = scmp.lt.s32.totalorder (%p2405_p3), %s170_s12, 2  ;;  %s1879_s14 = sshll.u32 (%p2405_p3), %s2250_s20, 3 }
  0x1e   : > { %s2954_s0 = sld [smem:[#allocation11_spill]] (%p2405_p3)  ;;  %s2447_s5 = scalar_lea.vmem (%p2405_p3), [#allocation2], %s1762_s13  }
  0x20   : > { %s2976_s12 = smov (!%p171_p13, %s170_s12), 2 }
  0x21   : > { %s1764_s27 = sshll.u32 %s2976_s12, 7  ;;  %s2445_s30 = sshll.u32 %s2976_s12, 2 }
  0x22   : > { %p1768_p0 = scmp.eq.s32.totalorder %s1764_s27, 0 }
  0x23   : > { %p181_p1 = scmp.lt.u32.totalorder (!%p1768_p0), %s2445_s30, 8 }
  0x24   : > { %s2443_s25 = scalar_lea.vmem %s2954_s0, %s1879_s14   ;;  %180 = sbr.rel (%p1768_p0) target bundleno = 148 (0x94), region = 32 }
  0x29   : > { %184 = sbr.rel (%p181_p1) target bundleno = 139 (0x8b), region = 36  ;;  %s2451_s26 = sand.u32 (!%p181_p1), 7, %s2445_s30  }
  0x2a   : > { %p203_p2 = scmp.eq.s32.totalorder (!%p181_p1), %s2451_s26, 0  ;;  %p1769_p3 = scmp.ne.s32.totalorder (!%p181_p1), %s2451_s26, 0 }
  0x2e   : > { %206 = sbr.rel (%p1769_p3) target bundleno = 90 (0x5a), region = 51  ;;  %s207_s29 = sshrl.u32 (!%p1769_p3), %s2445_s30, 3 }
  0x2f   : > { %s2458_s6 = sshrl.u32 (!%p1769_p3), %s207_s29, 5 }
  0x30   : > { %p1770_p4 = scmp.le.s32.totalorder (!%p1769_p3), %s2458_s6, 0 }
  0x33   : > { %1679 = sbr.rel (%p1770_p4) target bundleno = 74 (0x4a), region = 211  ;;  %s2955_s11 = smov (!%p1770_p4), %s2447_s5 }
  0x34   : > { %s2956_s12 = smov (!%p1770_p4), %s2443_s25  ;;  %s2467_s13 = smov (!%p1770_p4), 0  }
  0x35   : > { %s2469_s14 = smov (!%p1770_p4), 0  }
  0x38 LB: >> { %v220_v0 = vld [vmem:[%s2258_s12] sm:$0xff]  ;;  %v284_v1 = vld [vmem:[%s2258_s12 + $0x14] sm:$0xff]  ;;  %v290_v4 = vld [vmem:[%s2258_s12 + $0x2c] sm:$0xff]  ;;  %s348_s22 = sadd.s32 1, %s2262_s13  ;;  %s214_s14 = sadd.s32 1, %s2266_s14   ;;  %s2266_s14 = sphi %s2469_s14, %s214_s14   ;;  %s2262_s13 = sphi %s2467_s13, %s2959_s13   ;;  %s2258_s12 = sphi %s2956_s12, %s2958_s12   ;;  %s2254_s11 = sphi %s2955_s11, %s2957_s11  }
  0x39   : >> { %v286_v2 = vld [vmem:[%s2258_s12 + $0x1c] sm:$0xff]  ;;  %221 = vst [vmem:[%s2254_s11] sm:$0xff] %v220_v0  ;;  %285 = vst [vmem:[%s2254_s11 + $0x8] sm:$0xff] %v284_v1  ;;  %v288_v3 = vld [vmem:[%s2258_s12 + $0x24] sm:$0xff]  ;;  %p349_p5 = scmp.ge.s32.totalorder %s348_s22, %s2458_s6  ;;  %p213_p6 = scmp.ge.s32.totalorder %s214_s14, %s2458_s6 }
  0x3a   : >> { %287 = vst [vmem:[%s2254_s11 + $0x10] sm:$0xff] %v286_v2  ;;  %v292_v5 = vld [vmem:[%s2258_s12 + $0x34] sm:$0xff]  ;;  %289 = vst [vmem:[%s2254_s11 + $0x18] sm:$0xff] %v288_v3  ;;  %v294_v6 = vld [vmem:[%s2258_s12 + $0x3c] sm:$0xff] }
  0x3b   : >> { %291 = vst [vmem:[%s2254_s11 + $0x20] sm:$0xff] %v290_v4  ;;  %293 = vst [vmem:[%s2254_s11 + $0x28] sm:$0xff] %v292_v5  ;;  %v296_v7 = vld [vmem:[%s2258_s12 + $0x44] sm:$0xff]  ;;  %v298_v8 = vld [vmem:[%s2258_s12 + $0x4c] sm:$0xff]  ;;  %s2978_s22 = smov (%p349_p5, %s348_s22), 0 }
  0x3c   : >> { %295 = vst [vmem:[%s2254_s11 + $0x30] sm:$0xff] %v294_v6  ;;  %297 = vst [vmem:[%s2254_s11 + $0x38] sm:$0xff] %v296_v7  ;;  %v300_v9 = vld [vmem:[%s2258_s12 + $0x54] sm:$0xff]  ;;  %v302_v10 = vld [vmem:[%s2258_s12 + $0x5c] sm:$0xff]  ;;  %s1771_s24 = sshll.u32 %s2978_s22, 8 }
  0x3d   : >> { %299 = vst [vmem:[%s2254_s11 + $0x40] sm:$0xff] %v298_v8  ;;  %v304_v11 = vld [vmem:[%s2258_s12 + $0x64] sm:$0xff]  ;;  %301 = vst [vmem:[%s2254_s11 + $0x48] sm:$0xff] %v300_v9  ;;  %v306_v12 = vld [vmem:[%s2258_s12 + $0x6c] sm:$0xff]  ;;  %s353_s27 = scalar_lea.vmem %s2443_s25, %s1771_s24   ;;  %s354_s13 = scalar_lea.vmem %s2447_s5, %s1771_s24 [#allocation2]  }
  0x3e   : >> { %303 = vst [vmem:[%s2254_s11 + $0x50] sm:$0xff] %v302_v10  ;;  %305 = vst [vmem:[%s2254_s11 + $0x58] sm:$0xff] %v304_v11  ;;  %v308_v13 = vld [vmem:[%s2258_s12 + $0x74] sm:$0xff]  ;;  %v310_v14 = vld [vmem:[%s2258_s12 + $0x7c] sm:$0xff] }
  0x3f   : >> { %307 = vst [vmem:[%s2254_s11 + $0x60] sm:$0xff] %v306_v12  ;;  %309 = vst [vmem:[%s2254_s11 + $0x68] sm:$0xff] %v308_v13  ;;  %v312_v15 = vld [vmem:[%s2258_s12 + $0x84] sm:$0xff]  ;;  %v314_v16 = vld [vmem:[%s2258_s12 + $0x8c] sm:$0xff] }
  0x40   : >> { %311 = vst [vmem:[%s2254_s11 + $0x70] sm:$0xff] %v310_v14  ;;  %v316_v17 = vld [vmem:[%s2258_s12 + $0x94] sm:$0xff]  ;;  %313 = vst [vmem:[%s2254_s11 + $0x78] sm:$0xff] %v312_v15  ;;  %v318_v18 = vld [vmem:[%s2258_s12 + $0x9c] sm:$0xff] }
  0x41   : >> { %315 = vst [vmem:[%s2254_s11 + $0x80] sm:$0xff] %v314_v16  ;;  %317 = vst [vmem:[%s2254_s11 + $0x88] sm:$0xff] %v316_v17  ;;  %v320_v19 = vld [vmem:[%s2258_s12 + $0xa4] sm:$0xff]  ;;  %v322_v20 = vld [vmem:[%s2258_s12 + $0xac] sm:$0xff] }
  0x42   : >> { %319 = vst [vmem:[%s2254_s11 + $0x90] sm:$0xff] %v318_v18  ;;  %321 = vst [vmem:[%s2254_s11 + $0x98] sm:$0xff] %v320_v19  ;;  %v324_v21 = vld [vmem:[%s2258_s12 + $0xb4] sm:$0xff]  ;;  %v326_v22 = vld [vmem:[%s2258_s12 + $0xbc] sm:$0xff] }
  0x43   : >> { %323 = vst [vmem:[%s2254_s11 + $0xa0] sm:$0xff] %v322_v20  ;;  %v328_v23 = vld [vmem:[%s2258_s12 + $0xc4] sm:$0xff]  ;;  %325 = vst [vmem:[%s2254_s11 + $0xa8] sm:$0xff] %v324_v21  ;;  %v330_v24 = vld [vmem:[%s2258_s12 + $0xcc] sm:$0xff] }
  0x44   : >> { %327 = vst [vmem:[%s2254_s11 + $0xb0] sm:$0xff] %v326_v22  ;;  %329 = vst [vmem:[%s2254_s11 + $0xb8] sm:$0xff] %v328_v23  ;;  %v332_v25 = vld [vmem:[%s2258_s12 + $0xd4] sm:$0xff]  ;;  %v334_v26 = vld [vmem:[%s2258_s12 + $0xdc] sm:$0xff] }
  0x45   : >> { %331 = vst [vmem:[%s2254_s11 + $0xc0] sm:$0xff] %v330_v24  ;;  %333 = vst [vmem:[%s2254_s11 + $0xc8] sm:$0xff] %v332_v25  ;;  %v336_v27 = vld [vmem:[%s2258_s12 + $0xe4] sm:$0xff]  ;;  %v338_v28 = vld [vmem:[%s2258_s12 + $0xec] sm:$0xff]  ;;  %216 = sbr.rel (!%p213_p6) target bundleno = 56 (0x38), region = 217 }
  0x46   : >> { %335 = vst [vmem:[%s2254_s11 + $0xd0] sm:$0xff] %v334_v26  ;;  %v340_v29 = vld [vmem:[%s2258_s12 + $0xf4] sm:$0xff]  ;;  %337 = vst [vmem:[%s2254_s11 + $0xd8] sm:$0xff] %v336_v27  ;;  %v342_v30 = vld [vmem:[%s2258_s12 + $0xfc] sm:$0xff] }
  0x47   : >> { %339 = vst [vmem:[%s2254_s11 + $0xe0] sm:$0xff] %v338_v28  ;;  %341 = vst [vmem:[%s2254_s11 + $0xe8] sm:$0xff] %v340_v29  ;;  %v344_v31 = vld [vmem:[%s2258_s12 + $0x104] sm:$0xff]  ;;  %v346_v32 = vld [vmem:[%s2258_s12 + $0x10c] sm:$0xff]  ;;  %s2958_s12 = smov %s353_s27 }
  0x48   : >> { %343 = vst [vmem:[%s2254_s11 + $0xf0] sm:$0xff] %v342_v30  ;;  %345 = vst [vmem:[%s2254_s11 + $0xf8] sm:$0xff] %v344_v31 }
  0x49   : >> { %347 = vst [vmem:[%s2254_s11 + $0x100] sm:$0xff] %v346_v32  ;;  %s2957_s11 = smov %s354_s13  ;;  %s2959_s13 = smov %s2978_s22 }
  0x4a PF: > { %s2569_s24 = sand.u32 31, %s207_s29   ;;  %s1880_s21 = sshll.u32 %s2458_s6, 12 }
  0x4b   : > { %s359_s0 = sshra.s32 %s1880_s21, 4  ;;  %p1776_p9 = scmp.le.s32.totalorder %s2569_s24, 0 }
  0x4c   : > { %s2573_s28 = scalar_lea.vmem %s2443_s25, %s359_s0   ;;  %s363_s19 = scalar_lea.vmem %s2447_s5, %s359_s0 [#allocation2]  }
  0x4d   : > { %1693 = sbr.rel (%p1776_p9) target bundleno = 90 (0x5a), region = 222  ;;  %s2268_s22 = smov (!%p1776_p9), %s363_s19  }
  0x4e   : > { %s2272_s14 = smov (!%p1776_p9), %s2573_s28   ;;  %s2276_s27 = smov (!%p1776_p9), 0  }
  0x4f   : > { %s2280_s11 = smov (!%p1776_p9), 0  }
  0x52 LB: >> { %v375_v33 = vld [vmem:[%s2274_s14] sm:$0xff]  ;;  %v377_v34 = vld [vmem:[%s2274_s14 + $0x14] sm:$0xff]  ;;  %s379_s21 = sadd.s32 1, %s2278_s27  ;;  %s369_s11 = sadd.s32 1, %s2282_s11   ;;  %s2282_s11 = sphi %s2280_s11, %s369_s11   ;;  %s2278_s27 = sphi %s2276_s27, %s2277_s27   ;;  %s2274_s14 = sphi %s2272_s14, %s384_s14   ;;  %s2270_s22 = sphi %s2268_s22, %s385_s22  }
  0x53   : >> { %376 = vst [vmem:[%s2270_s22] sm:$0xff] %v375_v33  ;;  %378 = vst [vmem:[%s2270_s22 + $0x8] sm:$0xff] %v377_v34  ;;  %p380_p10 = scmp.ge.s32.totalorder %s379_s21, %s2569_s24  ;;  %p368_p13 = scmp.ge.s32.totalorder %s369_s11, %s2569_s24 }
  0x55   : >> { %s2980_s21 = smov (%p380_p10, %s379_s21), 0  ;;  %371 = sbr.rel (!%p368_p13) target bundleno = 82 (0x52), region = 228 }
  0x56   : >> { %s1777_s0 = sshll.u32 %s2980_s21, 3  ;;  %s2277_s27 = smov %s2980_s21  }
  0x57   : >> { %s384_s14 = scalar_lea.vmem %s2573_s28, %s1777_s0   ;;  %s385_s22 = scalar_lea.vmem %s363_s19, %s1777_s0 [#allocation2]  }
  0x5a PF: > { %388 = sbr.rel (%p203_p2) target bundleno = 139 (0x8b), region = 69  ;;  %s390_s29 = ssub.s32 (!%p203_p2), %s2445_s30, %s2451_s26 }
  0x5b   : > { %s394_s6 = sshrl.u32 (!%p203_p2), %s2445_s30, 3  ;;  %s2587_s12 = scalar_lea.vmem (!%p203_p2), %s2443_s25, %s390_s29 }
  0x5c   : > { %s2590_s13 = scalar_lea.vmem (!%p203_p2), %s2447_s5, %s390_s29 [#allocation2]  ;;  %s2594_s22 = sshrl.u32 (!%p203_p2), %s394_s6, 5 }
  0x5d   : > { %p1779_p0 = scmp.le.s32.totalorder (!%p203_p2), %s2594_s22, 0 }
  0x5f   : > { %1707 = sbr.rel (%p1779_p0) target bundleno = 118 (0x76), region = 233  ;;  %s2960_s19 = smov (!%p1779_p0), %s2447_s5 }
  0x60   : > { %s2961_s28 = smov (!%p1779_p0), %s2443_s25  ;;  %s2603_s24 = smov (!%p1779_p0), 0  }
  0x61   : > { %s2605_s14 = smov (!%p1779_p0), 0  }
  0x64 LB: >> { %v407_v35 = vld [vmem:[%s2290_s28] sm:$0xff]  ;;  %v471_v36 = vld [vmem:[%s2290_s28 + $0x14] sm:$0xff]  ;;  %v477_v39 = vld [vmem:[%s2290_s28 + $0x2c] sm:$0xff]  ;;  %s535_s27 = sadd.s32 1, %s2294_s24  ;;  %s401_s14 = sadd.s32 1, %s2298_s14   ;;  %s2298_s14 = sphi %s2605_s14, %s401_s14   ;;  %s2294_s24 = sphi %s2603_s24, %s2964_s24   ;;  %s2290_s28 = sphi %s2961_s28, %s2963_s28   ;;  %s2286_s19 = sphi %s2960_s19, %s2962_s19  }
  0x65   : >> { %v473_v37 = vld [vmem:[%s2290_s28 + $0x1c] sm:$0xff]  ;;  %408 = vst [vmem:[%s2286_s19] sm:$0xff] %v407_v35  ;;  %472 = vst [vmem:[%s2286_s19 + $0x8] sm:$0xff] %v471_v36  ;;  %v475_v38 = vld [vmem:[%s2290_s28 + $0x24] sm:$0xff]  ;;  %p536_p1 = scmp.ge.s32.totalorder %s535_s27, %s2594_s22  ;;  %p400_p2 = scmp.ge.s32.totalorder %s401_s14, %s2594_s22 }
  0x66   : >> { %474 = vst [vmem:[%s2286_s19 + $0x10] sm:$0xff] %v473_v37  ;;  %v479_v40 = vld [vmem:[%s2290_s28 + $0x34] sm:$0xff]  ;;  %476 = vst [vmem:[%s2286_s19 + $0x18] sm:$0xff] %v475_v38  ;;  %v481_v41 = vld [vmem:[%s2290_s28 + $0x3c] sm:$0xff] }
  0x67   : >> { %478 = vst [vmem:[%s2286_s19 + $0x20] sm:$0xff] %v477_v39  ;;  %480 = vst [vmem:[%s2286_s19 + $0x28] sm:$0xff] %v479_v40  ;;  %v483_v42 = vld [vmem:[%s2290_s28 + $0x44] sm:$0xff]  ;;  %v485_v43 = vld [vmem:[%s2290_s28 + $0x4c] sm:$0xff]  ;;  %s2982_s27 = smov (%p536_p1, %s535_s27), 0 }
  0x68   : >> { %482 = vst [vmem:[%s2286_s19 + $0x30] sm:$0xff] %v481_v41  ;;  %484 = vst [vmem:[%s2286_s19 + $0x38] sm:$0xff] %v483_v42  ;;  %v487_v44 = vld [vmem:[%s2290_s28 + $0x54] sm:$0xff]  ;;  %v489_v45 = vld [vmem:[%s2290_s28 + $0x5c] sm:$0xff]  ;;  %s1780_s11 = sshll.u32 %s2982_s27, 8  ;;  %s2964_s24 = smov %s2982_s27 }
  0x69   : >> { %486 = vst [vmem:[%s2286_s19 + $0x40] sm:$0xff] %v485_v43  ;;  %v491_v46 = vld [vmem:[%s2290_s28 + $0x64] sm:$0xff]  ;;  %488 = vst [vmem:[%s2286_s19 + $0x48] sm:$0xff] %v487_v44  ;;  %v493_v47 = vld [vmem:[%s2290_s28 + $0x6c] sm:$0xff]  ;;  %s540_s21 = scalar_lea.vmem %s2443_s25, %s1780_s11   ;;  %s541_s0 = scalar_lea.vmem %s2447_s5, %s1780_s11 [#allocation2]  }
  0x6a   : >> { %490 = vst [vmem:[%s2286_s19 + $0x50] sm:$0xff] %v489_v45  ;;  %492 = vst [vmem:[%s2286_s19 + $0x58] sm:$0xff] %v491_v46  ;;  %v495_v48 = vld [vmem:[%s2290_s28 + $0x74] sm:$0xff]  ;;  %v497_v49 = vld [vmem:[%s2290_s28 + $0x7c] sm:$0xff] }
  0x6b   : >> { %494 = vst [vmem:[%s2286_s19 + $0x60] sm:$0xff] %v493_v47  ;;  %496 = vst [vmem:[%s2286_s19 + $0x68] sm:$0xff] %v495_v48  ;;  %v499_v50 = vld [vmem:[%s2290_s28 + $0x84] sm:$0xff]  ;;  %v501_v51 = vld [vmem:[%s2290_s28 + $0x8c] sm:$0xff] }
  0x6c   : >> { %498 = vst [vmem:[%s2286_s19 + $0x70] sm:$0xff] %v497_v49  ;;  %v503_v52 = vld [vmem:[%s2290_s28 + $0x94] sm:$0xff]  ;;  %500 = vst [vmem:[%s2286_s19 + $0x78] sm:$0xff] %v499_v50  ;;  %v505_v53 = vld [vmem:[%s2290_s28 + $0x9c] sm:$0xff] }
  0x6d   : >> { %502 = vst [vmem:[%s2286_s19 + $0x80] sm:$0xff] %v501_v51  ;;  %504 = vst [vmem:[%s2286_s19 + $0x88] sm:$0xff] %v503_v52  ;;  %v507_v54 = vld [vmem:[%s2290_s28 + $0xa4] sm:$0xff]  ;;  %v509_v55 = vld [vmem:[%s2290_s28 + $0xac] sm:$0xff] }
  0x6e   : >> { %506 = vst [vmem:[%s2286_s19 + $0x90] sm:$0xff] %v505_v53  ;;  %508 = vst [vmem:[%s2286_s19 + $0x98] sm:$0xff] %v507_v54  ;;  %v511_v56 = vld [vmem:[%s2290_s28 + $0xb4] sm:$0xff]  ;;  %v513_v57 = vld [vmem:[%s2290_s28 + $0xbc] sm:$0xff] }
  0x6f   : >> { %510 = vst [vmem:[%s2286_s19 + $0xa0] sm:$0xff] %v509_v55  ;;  %v515_v58 = vld [vmem:[%s2290_s28 + $0xc4] sm:$0xff]  ;;  %512 = vst [vmem:[%s2286_s19 + $0xa8] sm:$0xff] %v511_v56  ;;  %v517_v59 = vld [vmem:[%s2290_s28 + $0xcc] sm:$0xff] }
  0x70   : >> { %514 = vst [vmem:[%s2286_s19 + $0xb0] sm:$0xff] %v513_v57  ;;  %516 = vst [vmem:[%s2286_s19 + $0xb8] sm:$0xff] %v515_v58  ;;  %v519_v60 = vld [vmem:[%s2290_s28 + $0xd4] sm:$0xff]  ;;  %v521_v61 = vld [vmem:[%s2290_s28 + $0xdc] sm:$0xff] }
  0x71   : >> { %518 = vst [vmem:[%s2286_s19 + $0xc0] sm:$0xff] %v517_v59  ;;  %520 = vst [vmem:[%s2286_s19 + $0xc8] sm:$0xff] %v519_v60  ;;  %v523_v62 = vld [vmem:[%s2290_s28 + $0xe4] sm:$0xff]  ;;  %v525_v63 = vld [vmem:[%s2290_s28 + $0xec] sm:$0xff]  ;;  %403 = sbr.rel (!%p400_p2) target bundleno = 100 (0x64), region = 239 }
  0x72   : >> { %522 = vst [vmem:[%s2286_s19 + $0xd0] sm:$0xff] %v521_v61  ;;  %v527_v0 = vld [vmem:[%s2290_s28 + $0xf4] sm:$0xff]  ;;  %524 = vst [vmem:[%s2286_s19 + $0xd8] sm:$0xff] %v523_v62  ;;  %v529_v1 = vld [vmem:[%s2290_s28 + $0xfc] sm:$0xff] }
  0x73   : >> { %526 = vst [vmem:[%s2286_s19 + $0xe0] sm:$0xff] %v525_v63  ;;  %528 = vst [vmem:[%s2286_s19 + $0xe8] sm:$0xff] %v527_v0  ;;  %v531_v2 = vld [vmem:[%s2290_s28 + $0x104] sm:$0xff]  ;;  %v533_v3 = vld [vmem:[%s2290_s28 + $0x10c] sm:$0xff]  ;;  %s2963_s28 = smov %s540_s21 }
  0x74   : >> { %530 = vst [vmem:[%s2286_s19 + $0xf0] sm:$0xff] %v529_v1  ;;  %532 = vst [vmem:[%s2286_s19 + $0xf8] sm:$0xff] %v531_v2 }
  0x75   : >> { %534 = vst [vmem:[%s2286_s19 + $0x100] sm:$0xff] %v533_v3  ;;  %s2962_s19 = smov %s541_s0 }
  0x76 PF: > { %s2705_s29 = sand.u32 31, %s394_s6   ;;  %s1882_s11 = sshll.u32 %s2594_s22, 12 }
  0x77   : > { %s546_s9 = sshra.s32 %s1882_s11, 4  ;;  %p1785_p3 = scmp.le.s32.totalorder %s2705_s29, 0 }
  0x78   : > { %s2709_s23 = scalar_lea.vmem %s2443_s25, %s546_s9   ;;  %s550_s0 = scalar_lea.vmem %s2447_s5, %s546_s9 [#allocation2]  }
  0x79   : > { %1721 = sbr.rel (%p1785_p3) target bundleno = 134 (0x86), region = 244  ;;  %s2300_s27 = smov (!%p1785_p3), %s550_s0  }
  0x7a   : > { %s2304_s14 = smov (!%p1785_p3), %s2709_s23   ;;  %s2308_s21 = smov (!%p1785_p3), 0  }
  0x7b   : > { %s2312_s19 = smov (!%p1785_p3), 0  }
  0x7e LB: >> { %v562_v4 = vld [vmem:[%s2306_s14] sm:$0xff]  ;;  %v564_v5 = vld [vmem:[%s2306_s14 + $0x14] sm:$0xff]  ;;  %s566_s6 = sadd.s32 1, %s2310_s21  ;;  %s556_s19 = sadd.s32 1, %s2314_s19   ;;  %s2314_s19 = sphi %s2312_s19, %s556_s19   ;;  %s2310_s21 = sphi %s2308_s21, %s2309_s21   ;;  %s2306_s14 = sphi %s2304_s14, %s571_s14   ;;  %s2302_s27 = sphi %s2300_s27, %s572_s27  }
  0x7f   : >> { %563 = vst [vmem:[%s2302_s27] sm:$0xff] %v562_v4  ;;  %565 = vst [vmem:[%s2302_s27 + $0x8] sm:$0xff] %v564_v5  ;;  %p567_p4 = scmp.ge.s32.totalorder %s566_s6, %s2705_s29  ;;  %p555_p5 = scmp.ge.s32.totalorder %s556_s19, %s2705_s29 }
  0x81   : >> { %s2984_s6 = smov (%p567_p4, %s566_s6), 0  ;;  %558 = sbr.rel (!%p555_p5) target bundleno = 126 (0x7e), region = 250 }
  0x82   : >> { %s1786_s9 = sshll.u32 %s2984_s6, 3  ;;  %s2309_s21 = smov %s2984_s6  }
  0x83   : >> { %s571_s14 = scalar_lea.vmem %s2709_s23, %s1786_s9   ;;  %s572_s27 = scalar_lea.vmem %s550_s0, %s1786_s9 [#allocation2]  }
  0x86 PF: > { %s2316_s22 = smov 1  }
  0x87   : > { %s573_s28 = sshll.u32 %s2316_s22, %s2451_s26 }
  0x88   : > { %s1788_s24 = sadd.s32 4294967295, %s573_s28 }
  0x89   : > { %v583_v6 = vld [vmem:[%s2587_s12] sm:%s1788_s24]  ;;  %v585_v7 = vld [vmem:[%s2587_s12 + $0x14] sm:%s1788_s24] }
  0x8a   : > { %584 = vst [vmem:[%s2590_s13] sm:%s1788_s24] %v583_v6  ;;  %586 = vst [vmem:[%s2590_s13 + $0x8] sm:%s1788_s24] %v585_v7 }
  0x8b PF: > { %p1789_p6 = scmp.ge.u32.totalorder %s2445_s30, 8 }
  0x8c   : > { %s2317_s11 = smov (!%p1789_p6), 1  }
  0x8d   : > { %187 = sbr.rel (%p1789_p6) target bundleno = 148 (0x94), region = 40  ;;  %s188_s23 = sshll.u32 (!%p1789_p6), %s2317_s11, %s2445_s30 }
  0x8e   : > { %s1790_s29 = sadd.s32 (!%p1789_p6), 4294967295, %s188_s23 }
  0x92   : > { %v198_v8 = vld [vmem:[%s2443_s25] sm:%s1790_s29]  ;;  %v200_v9 = vld [vmem:[%s2443_s25 + $0x14] sm:%s1790_s29] }
  0x93   : > { %199 = vst [vmem:[%s2447_s5] sm:%s1790_s29] %v198_v8  ;;  %201 = vst [vmem:[%s2447_s5 + $0x8] sm:%s1790_s29] %v200_v9 }
  0x94 PF: > { %590 = sbr.rel (!%p2413_p7) target bundleno = 153 (0x99), region = 94  ;;  %s592_s26 = sand.u32 (%p2413_p7), 1, %s2238_s17  }
  0x95   : > { %s1792_s12 = sshll.u32 (%p2413_p7), %s2250_s20, 3  ;;  %s1791_s13 = sshll.u32 (%p2413_p7), %s592_s26, 3 }
  0x96   : > { %s1641_s30 = scalar_lea.vmem (%p2413_p7), %s2937_s1, %s1792_s12  ;;  %s594_s25 = scalar_lea.vmem (%p2413_p7), [#allocation3], %s1791_s13 }
  0x97   : > { %v1793_v10 = vld [vmem:[%s1641_s30 + $0x8] sm:$0xf] (%p2413_p7)  ;;  %v1794_v11 = vld [vmem:[%s1641_s30 + $0x1c] sm:$0xf] (%p2413_p7) }
  0x98   : > { %616 = vst [vmem:[%s594_s25] sm:$0xf] (%p2413_p7), %v1793_v10  ;;  %618 = vst [vmem:[%s594_s25 + $0x4] sm:$0xf] (%p2413_p7), %v1794_v11 }
  0x99 PF: > { %p1795_p9 = scmp.ge.s32.totalorder %s2250_s20, 1  ;;  %p645_p7 = scmp.lt.s32.totalorder %s2250_s20, 3 }
  0x9b   : > { %p646_p10 = pnand %p1795_p9, %p645_p7 }
  0x9c   : > { %s2738_s7 = sand.u32 (!%p646_p10), 1, %s2242_s18   ;;  %s659_s14 = sand.u32 (!%p646_p10), 1, %s2234_s16  }
  0x9d   : > { %649 = sbr.rel (%p646_p10) target bundleno = 575 (0x23f), region = 135  ;;  %s1796_s5 = sshll.u32 (!%p646_p10), %s2738_s7, 4 }
  0x9e   : > { %s654_s21 = scalar_lea.vmem (!%p646_p10), [#allocation2], %s1796_s5  ;;  %s1797_s19 = sshll.u32 (!%p646_p10), %s659_s14, 3 }
  0x9f   : > { %s2319_s6 = smov (!%p646_p10), 127   ;;  %s661_s9 = scalar_lea.vmem (!%p646_p10), [#allocation3], %s1797_s19 }
  0xa0   : > { %s2320_s22 = smov (!%p646_p10), 126   ;;  %s2321_s16 = smov (!%p646_p10), 96  }
  0xa1   : > { %s2322_s28 = smov (!%p646_p10), 95   ;;  %s2323_s24 = smov (!%p646_p10), 94  }
  0xa2   : > { %v2318_v12 = vmov 0   ;;  %v2088_v13 = vld [vmem:[%s654_s21 + $0x4] ss:$8 sps:$4 sm:$0xff]   ;;  %v2746_v14 = vld [vmem:[%s654_s21] ss:$8 sps:$4 sm:$0xff]   ;;  %s2324_s11 = smov 64  }
  0xa3   : > { %785 = vmatprep.mubr.bf16.mxu0 %v2318_v12  ;;  %795 = vmatprep.mubr.bf16.mxu1 %v2318_v12  ;;  %v2091_v15 = vld [vmem:[%s661_s9] sm:$0xff]   ;;  %s2325_s23 = smov 63   ;;  %s2326_s29 = smov 62   ;;  %v1528_v18 = vld [vmem:[%s2939_s3 + $0x10] sm:$0xff]  ;;  %v1529_v19 = vld [vmem:[%s2939_s3 + $0x18] sm:$0xff]  ;;  %vm741_vm0 = vcmask 1039360  }
  0xa4   : > { %2086 = vset.pattern.permute.xlu0 %v2318_v12  ;;  %2087 = vset.pattern.permute.xlu1 %v2318_v12  ;;  %v1526_v16 = vld [vmem:[%s2939_s3] sm:$0xff]  ;;  %v1527_v17 = vld [vmem:[%s2939_s3 + $0x8] sm:$0xff]  ;;  %vm896_vm1 = vcmask 1031168   ;;  %v2092_v26 = vld [vmem:[%s2938_s2 + $0x10] sm:$0xff]   ;;  %vm746_vm2 = vcmask 130048   ;;  %vm989_vm3 = vcmask 785408  }
  0xa5   : > { %737 = vrot.lane.b32.xlu0 %v2088_v13, %s2319_s6  ;;  %735 = vrot.lane.b32.xlu1 %v2746_v14, %s2319_s6  ;;  %v2093_v27 = vld [vmem:[%s2938_s2 + $0x18] sm:$0xff]   ;;  %v2094_v35 = vld [vmem:[%s2938_s2] sm:$0xff]   ;;  %vm1082_vm4 = vcmask 777216   ;;  %vm1175_vm5 = vcmask 769024   ;;  %vm1268_vm6 = vcmask 523264   ;;  %vm1361_vm7 = vcmask 515072  }
  0xa6   : > { %v2095_v36 = vld [vmem:[%s2938_s2 + $0x20] sm:$0xff]   ;;  %v2096_v44 = vld [vmem:[%s2938_s2 + $0x8] sm:$0xff]   ;;  %v2098_v51 = vld [vmem:[%s2938_s2 + $0x30] sm:$0xff]   ;;  %vm1454_vm8 = vcmask 506880   ;;  %s1798_s27 = sshll.u32 %s2738_s7, 6  ;;  %s2965_s5 = sadd.s32 4294967295, %s2250_s20  }
  0xa7   : > { %v2097_v45 = vld [vmem:[%s2938_s2 + $0x28] sm:$0xff]   ;;  %v2099_v52 = vld [vmem:[%s2938_s2 + $0x40] sm:$0xff]   ;;  %v2100_v60 = vld [vmem:[%s2938_s2 + $0x38] sm:$0xff]   ;;  %s2869_s30 = scalar_lea.vmem [#allocation4], %s1798_s27  ;;  %s1884_s14 = sshll.u32 %s2965_s5, 8 }
  0xa8   : > { %v2101_v61 = vld [vmem:[%s2938_s2 + $0x48] sm:$0xff]   ;;  %v2102_v4 = vld [vmem:[%s2938_s2 + $0x50] sm:$0xff]   ;;  %v2103_v5 = vld [vmem:[%s2938_s2 + $0x60] sm:$0xff]   ;;  %s1588_s25 = sshll.u32 %s2869_s30, 4  ;;  %s1575_s9 = scalar_lea.sflag [#allocation5], %s2738_s7  ;;  %s2879_s25 = int_to_ptr.vmem [resolvable:$true] %s1588_s25 }
  0xa9   : > { %739 = vrot.lane.b32.xlu0 %v2091_v15, %s2319_s6  ;;  %892 = vrot.lane.b32.xlu1 %v2088_v13, %s2320_s22  ;;  %v2104_v8 = vld [vmem:[%s2938_s2 + $0x58] sm:$0xff]   ;;  %v2105_v9 = vld [vmem:[%s2938_s2 + $0x68] sm:$0xff]   ;;  %s2885_s6 = scalar_lea.hbm %s2940_s4, %s1884_s14 }
  0xaa   : > { %v2106_v10 = vld [vmem:[%s2938_s2 + $0x70] sm:$0xff]   ;;  %v2107_v11 = vld [vmem:[%s2938_s2 + $0x80] sm:$0xff]  }
  0xad   : > { %894 = vrot.lane.b32.xlu0 %v2091_v15, %s2320_s22  ;;  %890 = vrot.lane.b32.xlu1 %v2746_v14, %s2320_s22  ;;  %s2110_s22 = scalar_lea.vmem %s2879_s25, 1024 }
  0xae   : > { %p2111_p13 = scmp.ne.s32.totalorder %s2879_s25, %s2110_s22 }
  0xb0   : > { %p2112_p0 = pnand %p2111_p13, %p2420_p8 }
  0xb1   : > { %985 = vrot.lane.b32.xlu0 %v2088_v13, %s2321_s16  ;;  %987 = vrot.lane.b32.xlu1 %v2091_v15, %s2321_s16 }
  0xb2   : > { %p2113_p1 = pneg %p2112_p0 }
  0xb5   : > { %983 = vrot.lane.b32.xlu0 %v2746_v14, %s2321_s16  ;;  %1078 = vrot.lane.b32.xlu1 %v2088_v13, %s2322_s28  ;;  %s2327_s16 = smov [#allocation4]  }
  0xb9   : > { %1080 = vrot.lane.b32.xlu0 %v2091_v15, %s2322_s28  ;;  %1076 = vrot.lane.b32.xlu1 %v2746_v14, %s2322_s28  ;;  %s2114_s28 = sshll.u32 %s2327_s16, 4  ;;  %s2115_s28 = int_to_ptr.vmem [resolvable:$false] %s2114_s28 }
  0xba   : > { %p2117_p2 = scmp.lt.s32.totalorder %s2879_s25, %s2115_s28 }
  0xbd   : > { %1171 = vrot.lane.b32.xlu0 %v2088_v13, %s2323_s24  ;;  %1173 = vrot.lane.b32.xlu1 %v2091_v15, %s2323_s24 }
  0xc1   : > { %1169 = vrot.lane.b32.xlu0 %v2746_v14, %s2323_s24  ;;  %1264 = vrot.lane.b32.xlu1 %v2088_v13, %s2324_s11  ;;  %s2116_s24 = scalar_lea.vmem %s2115_s28, 2048 }
  0xc2   : > { %p2118_p3 = scmp.lt.s32.totalorder %s2116_s24, %s2110_s22 }
  0xc4   : > { %p2119_p4 = por %p2118_p3, %p2117_p2 }
  0xc5   : > { %1266 = vrot.lane.b32.xlu0 %v2091_v15, %s2324_s11  ;;  %1262 = vrot.lane.b32.xlu1 %v2746_v14, %s2324_s11 }
  0xc6   : > { %p2120_p5 = pnand %p2119_p4, %p2113_p1 }
  0xc9   : > { %1357 = vrot.lane.b32.xlu0 %v2088_v13, %s2325_s23  ;;  %1359 = vrot.lane.b32.xlu1 %v2091_v15, %s2325_s23 }
  0xcd   : > { %1355 = vrot.lane.b32.xlu0 %v2746_v14, %s2325_s23  ;;  %1450 = vrot.lane.b32.xlu1 %v2088_v13, %s2326_s29 }
  0xd1   : > { %1452 = vrot.lane.b32.xlu0 %v2091_v15, %s2326_s29  ;;  %1448 = vrot.lane.b32.xlu1 %v2746_v14, %s2326_s29 }
  0xd5   : > { %1532 = vperm.xlu0 %2086, %v1526_v16   ;;  %1537 = vperm.xlu1 %2087, %v1527_v17  }
  0xd9   : > { %1542 = vperm.xlu1 %2087, %v1528_v18   ;;  %1547 = vperm.xlu0 %2086, %v1529_v19  }
 0x117   : > { %v738_v20 = vpop.permute.xlu0 %737  ;;  %v736_v21 = vpop.permute.xlu1 %735 }
 0x118   : > { %v742_v25 = vsel %vm741_vm0, %v736_v21, %v738_v20 }
 0x11b   : > { %v740_v22 = vpop.permute.xlu0 %739  ;;  %v893_v23 = vpop.permute.xlu1 %892 }
 0x11c   : > { %v743_v24 = vsel %vm741_vm0, %v738_v20, %v740_v22 }
 0x11d   : > { %767 = vmatprep.subr.bf16.mxu0 %v743_v24  ;;  %1887 = vmatprep.subr.bf16.mxu1 %v743_v24 }
 0x11e   : > { %768 = vmatpush1.bf16.msra.mxu0 %v742_v25  ;;  %1888 = vmatpush1.bf16.msra.mxu1 %v742_v25 }
 0x11f   : > { %v895_v28 = vpop.permute.xlu0 %894  ;;  %836 = vmatprep.subr.bf16.mxu1 %v2088_v13  ;;  %v891_v29 = vpop.permute.xlu1 %890  ;;  %v2108_v13 = vld [vmem:[%s2938_s2 + $0x78] sm:$0xff]  }
 0x120   : > { %v898_v30 = vsel %vm896_vm1, %v893_v23, %v895_v28  ;;  %v897_v31 = vsel %vm896_vm1, %v891_v29, %v893_v23 }
 0x121   : > { %1808 = vmatmul.mubr.msk.bf16.vlgmr.msra.gmra.mxu0 %vm746_vm2, %v2092_v26  ;;  %1809 = vmatmul.mubr.msk.bf16.vlgmr.msra.gmra.mxu1 %vm746_vm2, %v2093_v27 }
 0x122   : > { %921 = vmatprep.subr.bf16.mxu0 %v898_v30  ;;  %837 = vmatpush1.bf16.msra.mxu1 %v2746_v14  ;;  %v2109_v14 = vld [vmem:[%s2938_s2 + $0x88] sm:$0xff]  }
 0x123   : > { %922 = vmatpush1.bf16.msra.mxu0 %v897_v31  ;;  %v986_v32 = vpop.permute.xlu0 %985  ;;  %854 = vmatprep.mubr.bf16.mxu1 %v2318_v12  ;;  %v988_v33 = vpop.permute.xlu1 %987 }
 0x124   : > { %939 = vmatprep.mubr.bf16.mxu0 %v2318_v12  ;;  %v991_v34 = vsel %vm989_vm3, %v986_v32, %v988_v33 }
 0x125   : > { %1014 = vmatprep.subr.bf16.mxu1 %v991_v34 }
 0x127   : > { %v984_v37 = vpop.permute.xlu0 %983  ;;  %v1079_v39 = vpop.permute.xlu1 %1078 }
 0x128   : > { %v990_v38 = vsel %vm989_vm3, %v984_v37, %v986_v32 }
 0x129   : > { %1812 = vmatmul.mubr.msk.bf16.vlgmr.msra.gmra.mxu1 %vm746_vm2, %v2094_v35  ;;  %1820 = vmatmul.mubr.msk.bf16.vlgmr.msra.gmra.mxu0 %vm746_vm2, %v2095_v36 }
 0x12a   : > { %1015 = vmatpush1.bf16.msra.mxu1 %v990_v38  ;;  %864 = vmatprep.mubr.bf16.mxu1 %v2318_v12 }
 0x12b   : > { %v1081_v40 = vpop.permute.xlu0 %1080  ;;  %949 = vmatprep.mubr.bf16.mxu0 %v2318_v12  ;;  %v1077_v41 = vpop.permute.xlu1 %1076 }
 0x12c   : > { %v1084_v42 = vsel %vm1082_vm4, %v1079_v39, %v1081_v40  ;;  %v1083_v43 = vsel %vm1082_vm4, %v1077_v41, %v1079_v39 }
 0x12d   : > { %1107 = vmatprep.subr.bf16.mxu0 %v1084_v42 }
 0x12e   : > { %1108 = vmatpush1.bf16.msra.mxu0 %v1083_v43 }
 0x12f   : > { %v1172_v46 = vpop.permute.xlu0 %1171  ;;  %v1174_v47 = vpop.permute.xlu1 %1173 }
 0x130   : > { %v1177_v48 = vsel %vm1175_vm5, %v1172_v46, %v1174_v47 }
 0x131   : > { %1813 = vmatmul.mubr.msk.bf16.gmra.mxu1 %vm746_vm2, %v2096_v44  ;;  %1821 = vmatmul.mubr.msk.bf16.gmra.mxu0 %vm746_vm2, %v2097_v45 }
 0x132   : > { %1200 = vmatprep.subr.bf16.mxu1 %v1177_v48  ;;  %1032 = vmatprep.mubr.bf16.mxu1 %v2318_v12 }
 0x133   : > { %v1170_v49 = vpop.permute.xlu0 %1169  ;;  %1125 = vmatprep.mubr.bf16.mxu0 %v2318_v12  ;;  %v1265_v50 = vpop.permute.xlu1 %1264 }
 0x134   : > { %v1176_v53 = vsel %vm1175_vm5, %v1170_v49, %v1172_v46 }
 0x137   : > { %v1267_v54 = vpop.permute.xlu0 %1266  ;;  %v1263_v55 = vpop.permute.xlu1 %1262 }
 0x138   : > { %v1270_v56 = vsel %vm1268_vm6, %v1265_v50, %v1267_v54  ;;  %v1269_v57 = vsel %vm1268_vm6, %v1263_v55, %v1265_v50 }
 0x139   : > { %1828 = vmatmul.mubr.msk.bf16.vlgmr.msra.gmra.mxu1 %vm746_vm2, %v2098_v51  ;;  %1836 = vmatmul.mubr.msk.bf16.vlgmr.msra.gmra.mxu0 %vm746_vm2, %v2099_v52 }
 0x13a   : > { %1201 = vmatpush1.bf16.msra.mxu1 %v1176_v53  ;;  %1293 = vmatprep.subr.bf16.mxu0 %v1270_v56 }
 0x13b   : > { %1294 = vmatpush1.bf16.msra.mxu0 %v1269_v57  ;;  %v1358_v58 = vpop.permute.xlu0 %1357  ;;  %1042 = vmatprep.mubr.bf16.mxu1 %v2318_v12  ;;  %v1360_v59 = vpop.permute.xlu1 %1359 }
 0x13c   : > { %1135 = vmatprep.mubr.bf16.mxu0 %v2318_v12  ;;  %v1363_v62 = vsel %vm1361_vm7, %v1358_v58, %v1360_v59 }
 0x13d   : > { %1386 = vmatprep.subr.bf16.mxu1 %v1363_v62 }
 0x13f   : > { %v1356_v63 = vpop.permute.xlu0 %1355  ;;  %v1451_v0 = vpop.permute.xlu1 %1450 }
 0x140   : > { %v1362_v6 = vsel %vm1361_vm7, %v1356_v63, %v1358_v58 }
 0x141   : > { %1829 = vmatmul.mubr.msk.bf16.gmra.mxu1 %vm746_vm2, %v2100_v60  ;;  %1837 = vmatmul.mubr.msk.bf16.gmra.mxu0 %vm746_vm2, %v2101_v61 }
 0x142   : > { %1218 = vmatprep.mubr.bf16.mxu1 %v2318_v12  ;;  %1311 = vmatprep.mubr.bf16.mxu0 %v2318_v12 }
 0x143   : > { %v1453_v1 = vpop.permute.xlu0 %1452  ;;  %v1449_v2 = vpop.permute.xlu1 %1448 }
 0x144   : > { %v1456_v3 = vsel %vm1454_vm8, %v1451_v0, %v1453_v1  ;;  %v1455_v7 = vsel %vm1454_vm8, %v1449_v2, %v1451_v0 }
 0x145   : > { %1479 = vmatprep.subr.bf16.mxu0 %v1456_v3 }
 0x149   : > { %1844 = vmatmul.mubr.msk.bf16.vlgmr.msra.gmra.mxu1 %vm746_vm2, %v2102_v4  ;;  %1852 = vmatmul.mubr.msk.bf16.vlgmr.msra.gmra.mxu0 %vm746_vm2, %v2103_v5 }
 0x14a   : > { %1387 = vmatpush1.bf16.msra.mxu1 %v1362_v6  ;;  %1480 = vmatpush1.bf16.msra.mxu0 %v1455_v7 }
 0x14b   : > { %1228 = vmatprep.mubr.bf16.mxu1 %v2318_v12  ;;  %1321 = vmatprep.mubr.bf16.mxu0 %v2318_v12 }
 0x151   : > { %1845 = vmatmul.mubr.msk.bf16.gmra.mxu1 %vm746_vm2, %v2104_v8  ;;  %1853 = vmatmul.mubr.msk.bf16.gmra.mxu0 %vm746_vm2, %v2105_v9 }
 0x152   : > { %1404 = vmatprep.mubr.bf16.mxu1 %v2318_v12  ;;  %1497 = vmatprep.mubr.bf16.mxu0 %v2318_v12 }
 0x159   : > { %1860 = vmatmul.mubr.msk.bf16.vlgmr.msra.gmra.mxu1 %vm746_vm2, %v2106_v10  ;;  %1868 = vmatmul.mubr.msk.bf16.vlgmr.msra.gmra.mxu0 %vm746_vm2, %v2107_v11 }
 0x15a   : > { %1414 = vmatprep.mubr.bf16.mxu1 %v2318_v12  ;;  %1507 = vmatprep.mubr.bf16.mxu0 %v2318_v12 }
 0x161   : > { %1861 = vmatmul.mubr.msk.bf16.gmra.mxu1 %vm746_vm2, %v2108_v13  ;;  %1869 = vmatmul.mubr.msk.bf16.gmra.mxu0 %vm746_vm2, %v2109_v14 }
 0x1e1   : > { %v787_v15 = vpop.f32.mrf.mxu0  ;;  %v797_v16 = vpop.f32.mrf.mxu1 }
 0x1e3   : > { %v789_v17 = vpop.f32.mrf.mxu0  ;;  %v799_v18 = vpop.f32.mrf.mxu1 }
 0x1e5   : > { %v791_v19 = vpop.f32.mrf.mxu0  ;;  %v801_v20 = vpop.f32.mrf.mxu1 }
 0x1e7   : > { %v793_v21 = vpop.f32.mrf.mxu0  ;;  %v2859_v12 = vpop.f32.mrf.mxu1 }
 0x1e9   : > { %v856_v22 = vpop.f32.mrf.mxu1  ;;  %v941_v23 = vpop.f32.mrf.mxu0 }
 0x1ea   : > { %v857_v54 = vadd.f32 %v856_v22, %v787_v15 }
 0x1eb   : > { %v858_v24 = vpop.f32.mrf.mxu1  ;;  %v943_v25 = vpop.f32.mrf.mxu0 }
 0x1ec   : > { %v859_v57 = vadd.f32 %v858_v24, %v789_v17  ;;  %v960_v60 = vadd.f32 %v941_v23, %v857_v54 }
 0x1ed   : > { %v860_v26 = vpop.f32.mrf.mxu1  ;;  %v945_v27 = vpop.f32.mrf.mxu0 }
 0x1ee   : > { %v861_v61 = vadd.f32 %v860_v26, %v791_v19  ;;  %v961_v0 = vadd.f32 %v943_v25, %v859_v57 }
 0x1ef   : > { %v862_v28 = vpop.f32.mrf.mxu1  ;;  %v947_v29 = vpop.f32.mrf.mxu0 }
 0x1f0   : > { %v863_v1 = vadd.f32 %v862_v28, %v793_v21  ;;  %v962_v6 = vadd.f32 %v945_v27, %v861_v61 }
 0x1f1   : > { %v866_v30 = vpop.f32.mrf.mxu1  ;;  %v951_v31 = vpop.f32.mrf.mxu0 }
 0x1f2   : > { %v867_v3 = vadd.f32 %v866_v30, %v797_v16  ;;  %v963_v11 = vadd.f32 %v947_v29, %v863_v1 }
 0x1f3   : > { %v868_v32 = vpop.f32.mrf.mxu1  ;;  %v953_v33 = vpop.f32.mrf.mxu0 }
 0x1f4   : > { %v869_v8 = vadd.f32 %v868_v32, %v799_v18  ;;  %v964_v15 = vadd.f32 %v951_v31, %v867_v3 }
 0x1f5   : > { %v870_v34 = vpop.f32.mrf.mxu1  ;;  %v955_v35 = vpop.f32.mrf.mxu0 }
 0x1f6   : > { %v871_v17 = vadd.f32 %v870_v34, %v801_v20  ;;  %v965_v21 = vadd.f32 %v953_v33, %v869_v8 }
 0x1f7   : > { %v872_v36 = vpop.f32.mrf.mxu1  ;;  %v957_v37 = vpop.f32.mrf.mxu0 }
 0x1f8   : > { %v873_v16 = vadd.f32 %v872_v36, %v2859_v12  ;;  %v966_v32 = vadd.f32 %v955_v35, %v871_v17 }
 0x1f9   : > { %v1034_v38 = vpop.f32.mrf.mxu1  ;;  %v1127_v39 = vpop.f32.mrf.mxu0 }
 0x1fa   : > { %v1053_v2 = vadd.f32 %v1034_v38, %v960_v60  ;;  %v967_v34 = vadd.f32 %v957_v37, %v873_v16 }
 0x1fb   : > { %v1036_v40 = vpop.f32.mrf.mxu1  ;;  %v1129_v41 = vpop.f32.mrf.mxu0 }
 0x1fc   : > { %v1054_v7 = vadd.f32 %v1036_v40, %v961_v0  ;;  %v1146_v13 = vadd.f32 %v1127_v39, %v1053_v2 }
 0x1fd   : > { %v1038_v42 = vpop.f32.mrf.mxu1  ;;  %v1131_v43 = vpop.f32.mrf.mxu0 }
 0x1fe   : > { %v1055_v14 = vadd.f32 %v1038_v42, %v962_v6  ;;  %v1147_v23 = vadd.f32 %v1129_v41, %v1054_v7 }
 0x1ff   : > { %v1040_v44 = vpop.f32.mrf.mxu1  ;;  %v1133_v45 = vpop.f32.mrf.mxu0 }
 0x200   : > { %v1056_v24 = vadd.f32 %v1040_v44, %v963_v11  ;;  %v1148_v30 = vadd.f32 %v1131_v43, %v1055_v14 }
 0x201   : > { %v1044_v46 = vpop.f32.mrf.mxu1  ;;  %v1137_v47 = vpop.f32.mrf.mxu0 }
 0x202   : > { %v1057_v26 = vadd.f32 %v1044_v46, %v964_v15  ;;  %v1149_v40 = vadd.f32 %v1133_v45, %v1056_v24  ;;  %v1533_v46 = vpop.permute.xlu0 %1532 }
 0x203   : > { %v1046_v48 = vpop.f32.mrf.mxu1  ;;  %v1139_v49 = vpop.f32.mrf.mxu0 }
 0x204   : > { %v1058_v38 = vadd.f32 %v1046_v48, %v965_v21  ;;  %v1150_v42 = vadd.f32 %v1137_v47, %v1057_v26 }
 0x205   : > { %v1048_v50 = vpop.f32.mrf.mxu1  ;;  %v2861_v51 = vpop.f32.mrf.mxu0 }
 0x206   : > { %v1059_v41 = vadd.f32 %v1048_v50, %v966_v32 }
 0x207   : > { %v1050_v52 = vpop.f32.mrf.mxu1  ;;  %v2863_v53 = vpop.f32.mrf.mxu0 }
 0x208   : > { %v1060_v43 = vadd.f32 %v1050_v52, %v967_v34  ;;  %v1152_v37 = vadd.f32 %v2861_v51, %v1059_v41  ;;  %v1548_v34 = vpop.permute.xlu0 %1547 }
 0x209   : > { %v1220_v55 = vpop.f32.mrf.mxu1  ;;  %v1313_v56 = vpop.f32.mrf.mxu0 }
 0x20a   : > { %v1239_v25 = vadd.f32 %v1220_v55, %v1146_v13  ;;  %v1151_v55 = vadd.f32 %v1139_v49, %v1058_v38  ;;  %v1153_v49 = vadd.f32 %v2863_v53, %v1060_v43 }
 0x20b   : > { %v1222_v58 = vpop.f32.mrf.mxu1  ;;  %v1315_v59 = vpop.f32.mrf.mxu0 }
 0x20c   : > { %v1240_v18 = vadd.f32 %v1222_v58, %v1147_v23  ;;  %v1332_v31 = vadd.f32 %v1313_v56, %v1239_v25  ;;  %v1538_v56 = vpop.permute.xlu1 %1537 }
 0x20d   : > { %v1224_v62 = vpop.f32.mrf.mxu1  ;;  %v1317_v63 = vpop.f32.mrf.mxu0 }
 0x20e   : > { %v1241_v20 = vadd.f32 %v1224_v62, %v1148_v30  ;;  %v1333_v54 = vadd.f32 %v1315_v59, %v1240_v18 }
 0x20f   : > { %v1226_v4 = vpop.f32.mrf.mxu1  ;;  %v1319_v5 = vpop.f32.mrf.mxu0 }
 0x210   : > { %v1242_v12 = vadd.f32 %v1226_v4, %v1149_v40  ;;  %v1334_v58 = vadd.f32 %v1317_v63, %v1241_v20  ;;  %v1543_v15 = vpop.permute.xlu1 %1542 }
 0x211   : > { %v1230_v9 = vpop.f32.mrf.mxu1  ;;  %v1323_v10 = vpop.f32.mrf.mxu0 }
 0x212   : > { %v1243_v57 = vadd.f32 %v1230_v9, %v1150_v42  ;;  %v1335_v62 = vadd.f32 %v1319_v5, %v1242_v12 }
 0x213   : > { %v1232_v22 = vpop.f32.mrf.mxu1  ;;  %v1325_v19 = vpop.f32.mrf.mxu0 }
 0x214   : > { %v1244_v47 = vadd.f32 %v1232_v22, %v1151_v55  ;;  %v1336_v52 = vadd.f32 %v1323_v10, %v1243_v57 }
 0x215   : > { %v1234_v28 = vpop.f32.mrf.mxu1  ;;  %v1327_v27 = vpop.f32.mrf.mxu0 }
 0x216   : > { %v1245_v2 = vadd.f32 %v1234_v28, %v1152_v37  ;;  %v1337_v9 = vadd.f32 %v1325_v19, %v1244_v47 }
 0x217   : > { %v1236_v29 = vpop.f32.mrf.mxu1  ;;  %v1329_v39 = vpop.f32.mrf.mxu0 }
 0x218   : > { %v1246_v11 = vadd.f32 %v1236_v29, %v1153_v49  ;;  %v1338_v17 = vadd.f32 %v1327_v27, %v1245_v2 }
 0x219   : > { %v1406_v44 = vpop.f32.mrf.mxu1  ;;  %v1499_v33 = vpop.f32.mrf.mxu0 }
 0x21a   : > { %v1425_v36 = vadd.f32 %v1406_v44, %v1332_v31  ;;  %v1339_v16 = vadd.f32 %v1329_v39, %v1246_v11 }
 0x21b   : > { %v1408_v35 = vpop.f32.mrf.mxu1  ;;  %v1501_v48 = vpop.f32.mrf.mxu0 }
 0x21c   : > { %v1518_v60 = vadd.f32 %v1499_v33, %v1425_v36  ;;  %v1426_v45 = vadd.f32 %v1408_v35, %v1333_v54 }
 0x21d   : > { %v1410_v50 = vpop.f32.mrf.mxu1  ;;  %v1503_v61 = vpop.f32.mrf.mxu0 }
 0x21e   : > { %v1519_v59 = vadd.f32 %v1501_v48, %v1426_v45  ;;  %v1550_v0 = vadd.f32 %v1533_v46, %v1518_v60  ;;  %v1427_v1 = vadd.f32 %v1410_v50, %v1334_v58 }
 0x21f   : > { %v1412_v3 = vpop.f32.mrf.mxu1  ;;  %v1505_v4 = vpop.f32.mrf.mxu0 }
 0x220   : > { %v1551_v63 = vadd.f32 %v1533_v46, %v1519_v59  ;;  %v1558_v6 = vmax.f32 %v1550_v0, 0.0  ;;  %v1520_v7 = vadd.f32 %v1503_v61, %v1427_v1  ;;  %v1428_v8 = vadd.f32 %v1412_v3, %v1335_v62 }
 0x221   : > { %v1416_v51 = vpop.f32.mrf.mxu1  ;;  %v1509_v13 = vpop.f32.mrf.mxu0 }
 0x222   : > { %v1559_v14 = vmax.f32 %v1551_v63, 0.0  ;;  %1566 = vst [vmem:[%s2869_s30] sm:$0xff] %v1558_v6  ;;  %v1521_v5 = vadd.f32 %v1505_v4, %v1428_v8  ;;  %v1429_v53 = vadd.f32 %v1416_v51, %v1336_v52  ;;  %v1552_v10 = vadd.f32 %v1538_v56, %v1520_v7 }
 0x223   : > { %v1418_v22 = vpop.f32.mrf.mxu1  ;;  %v1511_v23 = vpop.f32.mrf.mxu0 }
 0x224   : > { %1567 = vst [vmem:[%s2869_s30 + $0x8] sm:$0xff] %v1559_v14  ;;  %v1522_v19 = vadd.f32 %v1509_v13, %v1429_v53  ;;  %v1553_v24 = vadd.f32 %v1538_v56, %v1521_v5  ;;  %v1560_v25 = vmax.f32 %v1552_v10, 0.0  ;;  %v1430_v21 = vadd.f32 %v1418_v22, %v1337_v9 }
 0x225   : > { %v1420_v26 = vpop.f32.mrf.mxu1  ;;  %v1513_v28 = vpop.f32.mrf.mxu0 }
 0x226   : > { %v1561_v30 = vmax.f32 %v1553_v24, 0.0  ;;  %1568 = vst [vmem:[%s2869_s30 + $0x10] sm:$0xff] %v1560_v25  ;;  %v1523_v18 = vadd.f32 %v1511_v23, %v1430_v21  ;;  %v1431_v32 = vadd.f32 %v1420_v26, %v1338_v17  ;;  %v1554_v38 = vadd.f32 %v1543_v15, %v1522_v19 }
 0x227   : > { %v1422_v27 = vpop.f32.mrf.mxu1  ;;  %v1515_v39 = vpop.f32.mrf.mxu0 }
 0x228   : > { %1569 = vst [vmem:[%s2869_s30 + $0x18] sm:$0xff] %v1561_v30  ;;  %v1524_v29 = vadd.f32 %v1513_v28, %v1431_v32  ;;  %v1555_v40 = vadd.f32 %v1543_v15, %v1523_v18  ;;  %v1562_v31 = vmax.f32 %v1554_v38, 0.0  ;;  %v1432_v20 = vadd.f32 %v1422_v27, %v1339_v16 }
 0x22a   : > { %v1563_v42 = vmax.f32 %v1555_v40, 0.0  ;;  %1570 = vst [vmem:[%s2869_s30 + $0x20] sm:$0xff] %v1562_v31  ;;  %v1525_v41 = vadd.f32 %v1515_v39, %v1432_v20  ;;  %v1556_v44 = vadd.f32 %v1548_v34, %v1524_v29 }
 0x22c   : > { %1571 = vst [vmem:[%s2869_s30 + $0x28] sm:$0xff] %v1563_v42  ;;  %v1557_v33 = vadd.f32 %v1548_v34, %v1525_v41  ;;  %v1564_v54 = vmax.f32 %v1556_v44, 0.0 }
 0x22e   : > { %v1565_v12 = vmax.f32 %v1557_v33, 0.0  ;;  %1572 = vst [vmem:[%s2869_s30 + $0x30] sm:$0xff] %v1564_v54 }
 0x230   : > { %1573 = vst [vmem:[%s2869_s30 + $0x38] sm:$0xff] %v1565_v12 }
 0x231   : > { %2123 = shalt.err (!%p2120_p5)
}
 0x232   : > { %s2124_s11 = scalar_lea.hbm %s2885_s6, 1024  ;;  %s2128_s26 = scalar_lea.hbm %s2940_s4, 2048 }
 0x233   : > { %p2125_p6 = scmp.ne.s32.totalorder %s2885_s6, %s2124_s11  ;;  %p2129_p10 = scmp.lt.s32.totalorder %s2885_s6, %s2940_s4 }
 0x234   : > { %p2130_p13 = scmp.lt.s32.totalorder %s2128_s26, %s2124_s11 }
 0x235   : > { %p2126_p9 = pnand %p2125_p6, %p2420_p8 }
 0x236   : > { %p2131_p0 = por %p2130_p13, %p2129_p10 }
 0x237   : > { %p2127_p7 = pneg %p2126_p9 }
 0x239   : > { %p2132_p1 = pnand %p2131_p0, %p2127_p7 }
 0x23b   : > { %2135 = shalt.err (!%p2132_p1)
}
 0x23c   : > { %s2328_s0 = smov 256   ;;  %s2329_s27 = smov 512  }
 0x23d   : > { %s2330_s30 = smov 16  }
 0x23e   : > { %1889 = dma.vmem_to_hbm [thread:$0]  (%p2420_p8), %s2879_s25, 1024, %s2885_s6, %s1575_s9, %s2328_s0, %s2329_s27, %s2330_s30  }
 0x23f PF: > { %s1603_s5 = sand.u32 1, %s2230_s15   ;;  %p1892_p2 = pnand %p1761_p12, %p2429_p11 }
 0x240   : > { %s1604_s14 = scalar_lea.sflag [#allocation5], %s1603_s5 }
 0x241   : > { %p1893_p3 = pneg %p1892_p2 }
 0x243   : > { %2225 = dma.done.wait (%p1893_p3), %s1604_s14, 1024  }
 0x244   : > { %2227 = vsyncadd (%p1893_p3), %s1604_s14, 4294966272  ;;  %s2966_s20 = sld [smem:[#allocation8_spill]]  ;;  %s2970_s15 = smov %s2242_s18 }
 0x245   : > { %s2967_s21 = sld [smem:[#allocation10_spill]]  ;;  %s2971_s16 = smov %s2238_s17 }
 0x246   : > { %s2968_s19 = sld [smem:[#allocation7_spill]] }
 0x247   : > { %s2969_s8 = sld [smem:[#allocation9_spill]] }
 0x24a   : > { %p14_p8 = scmp.ge.s32.totalorder %s2966_s20, 4  }
 0x24b   : > { %s2972_s17 = smov %s2967_s21 }
 0x24c   : > { %s2973_s18 = smov %s2968_s19  ;;  %16 = sbr.rel (!%p14_p8) target bundleno = 6 (0x6), region = 261 }
 0x24d   : > { %s2974_s19 = smov %s2969_s8 }
 0x251   :  { %1609 = vsyncpa [#allocation5], 1 }
 0x252   :  { %1611 = vsyncpa [#allocation5 + $0x1], 1 }

</bundles_post_ra>
